<compile_context>
chip_gen: v7x
topology: tpu7x:2x2x1
jax: 0.10.0
libtpu: 0.0.40
codegen_flags: <defaults>
</compile_context>

<pallas_src>
import functools
import math

import jax
import jax.numpy as jnp
from jax import lax
from jax.experimental import pallas as pl
from jax.experimental.pallas import tpu as pltpu


def _round_up(x, m):
    return ((x + m - 1) // m) * m


def _mlp_kernel(x_ref, w1_ref, b1_ref, w2_ref, b2_ref, o_ref, *, approximate):
    # x_ref:  (TM, Hf)  tile of (folded) input rows
    # w1_ref: (Hf, Mf)  fc1 weight, (in, out) layout (block-diag if folded)
    # b1_ref: (1, Mf)
    # w2_ref: (Mf, Hf)  fc2 weight, (in, out) layout (block-diag if folded)
    # b2_ref: (1, Hf)
    x = x_ref[...].astype(w1_ref.dtype)  # bf16 weights => full bf16 MXU path

    # fc1 + bias, accumulate in f32
    h = jnp.dot(x, w1_ref[...], preferred_element_type=jnp.float32)
    h = h + b1_ref[...].astype(jnp.float32)

    # GELU in f32
    if approximate:
        # tanh form — transcendental goes to the otherwise-idle EUP slot
        c = jnp.float32(0.7978845608028654)  # sqrt(2/pi)
        h = 0.5 * h * (1.0 + jnp.tanh(c * (h + jnp.float32(0.044715) * h * h * h)))
    else:
        # exact erf form — matches torch.nn.functional.gelu default
        h = 0.5 * h * (1.0 + lax.erf(h * jnp.float32(0.7071067811865476)))

    # dropout (eval) = identity

    # cast hidden back to the weight dtype so bf16 models keep the fast MXU path
    h = h.astype(w2_ref.dtype)

    # fc2 + bias
    y = jnp.dot(h, w2_ref[...], preferred_element_type=jnp.float32)
    y = y + b2_ref[...].astype(jnp.float32)

    # dropout (eval) = identity
    o_ref[...] = y.astype(o_ref.dtype)


def mlp_forward(x, w1, b1, w2, b2, *, tile_m=512, approximate=False,
                weights_dtype=None):
    """Fused MLP forward (dropout in eval mode).

    x:  (B, N, H) activations
    w1: (H, M), b1: (M,)   fc1 parameters ((in, out) layout)
    w2: (M, H), b2: (H,)   fc2 parameters ((in, out) layout)
    tile_m:        row tile in *folded* rows (rounded to the sublane pack)
    weights_dtype: optionally pre-cast weights (e.g. jnp.bfloat16 on v6e/v7x)
    """
    B, N, H = x.shape
    M = w1.shape[1]
    rows = B * N

    # ---- lane-density fold --------------------------------------------------
    if H < 128 and 128 % H == 0 and rows % (128 // H) == 0:
        fold = 128 // H
    else:
        fold = 1
    Hf, Mf = fold * H, fold * M
    rows_f = rows // fold

    if weights_dtype is not None:
        w1 = w1.astype(weights_dtype)
        w2 = w2.astype(weights_dtype)

    if fold > 1:
        eye = jnp.eye(fold, dtype=w1.dtype)
        w1f = jnp.kron(eye, w1)          # (Hf, Mf) block-diagonal
        w2f = jnp.kron(eye, w2)          # (Mf, Hf) block-diagonal
        b1f = jnp.tile(b1, fold)
        b2f = jnp.tile(b2, fold)
    else:
        w1f, w2f, b1f, b2f = w1, w2, b1, b2

    x2d = x.reshape(rows_f, Hf)          # pure row-major reshape, no data movement
    b1_2d = b1f.reshape(1, Mf)
    b2_2d = b2f.reshape(1, Hf)

    # ---- row tiling -----------------------------------------------------------
    pack = 16 if x.dtype == jnp.bfloat16 else 8      # sublane pack of streamed tiles
    tile_f = min(_round_up(max(tile_m, 1), pack), _round_up(rows_f, pack))
    if rows_f > pack:
        # guarantee grid >= 2 so the "parallel" row axis can shard across the two
        # TensorCores on v7x (one extra, cheap grid step on single-TC v5e/v6e)
        tile_f = min(tile_f, _round_up(pl.cdiv(rows_f, 2), pack))
    tile_f = max(pack, tile_f)
    grid = (pl.cdiv(rows_f, tile_f),)

    act_bytes = jnp.dtype(x.dtype).itemsize
    w_bytes = jnp.dtype(w1f.dtype).itemsize
    cost = pl.CostEstimate(
        flops=4 * rows_f * Hf * Mf,          # two (block-diagonal) matmuls
        transcendentals=rows * M,            # one erf/tanh per hidden element
        bytes_accessed=(2 * rows_f * Hf * act_bytes
                        + (w1f.size + w2f.size) * w_bytes
                        + (b1f.size + b2f.size) * jnp.dtype(b1f.dtype).itemsize),
    )

    out = pl.pallas_call(
        functools.partial(_mlp_kernel, approximate=approximate),
        out_shape=jax.ShapeDtypeStruct((rows_f, Hf), x.dtype),
        grid_spec=pltpu.PrefetchScalarGridSpec(
            num_scalar_prefetch=0,
            grid=grid,
            in_specs=[
                pl.BlockSpec((tile_f, Hf), lambda i: (i, 0)),   # x row tile (lane-dense)
                pl.BlockSpec((Hf, Mf), lambda i: (0, 0)),       # fc1 weight (resident)
                pl.BlockSpec((1, Mf), lambda i: (0, 0)),        # fc1 bias
                pl.BlockSpec((Mf, Hf), lambda i: (0, 0)),       # fc2 weight (resident)
                pl.BlockSpec((1, Hf), lambda i: (0, 0)),        # fc2 bias
            ],
            out_specs=pl.BlockSpec((tile_f, Hf), lambda i: (i, 0)),
        ),
        compiler_params=pltpu.CompilerParams(
            # parallel row axis → shards across v7x's two TensorCores
            dimension_semantics=("parallel",),
        ),
        cost_estimate=cost,
    )(x2d, w1f, b1_2d, w2f, b2_2d)

    return out.reshape(B, N, H)


def _reference(x, w1, b1, w2, b2):
    h = jnp.dot(x, w1) + b1
    h = jax.nn.gelu(h, approximate=False)
    return jnp.dot(h, w2) + b2


if __name__ == "__main__":
    # config.hidden_size = 32, config.transformer['mlp_dim'] = 128
    H, M = 32, 128

    key = jax.random.PRNGKey(0)
    kx, k1, k2, k3, k4, kx2 = jax.random.split(key, 6)

    # nn.Linear weights stored transposed to (in, out) for the kernel.
    w1 = jax.random.normal(k1, (H, M), dtype=jnp.float32) * (1.0 / math.sqrt(H))
    b1 = jax.random.normal(k2, (M,), dtype=jnp.float32) * 0.01
    w2 = jax.random.normal(k3, (M, H), dtype=jnp.float32) * (1.0 / math.sqrt(M))
    b2 = jax.random.normal(k4, (H,), dtype=jnp.float32) * 0.01

    # Case 1: tiny sequence — 16 rows fold to 4 fat rows, single grid step.
    B, N = 2, 8
    x = jax.random.normal(kx, (B, N, H), dtype=jnp.float32)
    out = jax.block_until_ready(mlp_forward(x, w1, b1, w2, b2))
    ref = _reference(x, w1, b1, w2, b2)
    assert out.shape == (B, N, H)
    assert jnp.allclose(out, ref, atol=1e-4, rtol=1e-4), "mismatch vs reference (case 1)"

    # Case 2: rows not a multiple of the tile — 200 rows → 50 fat rows, the
    # grid>=2 clamp gives two steps with a masked partial last block.
    B2, N2 = 2, 100
    x2 = jax.random.normal(kx2, (B2, N2, H), dtype=jnp.float32)
    out2 = jax.block_until_ready(mlp_forward(x2, w1, b1, w2, b2, tile_m=128))
    ref2 = _reference(x2, w1, b1, w2, b2)
    assert out2.shape == (B2, N2, H)
    assert jnp.allclose(out2, ref2, atol=1e-4, rtol=1e-4), "mismatch vs reference (case 2)"

    # Case 3: bf16 weight path (v6e/v7x fast-MXU option) — loose tolerance vs
    # the f32 reference since weights/activations are rounded to bf16.
    out3 = jax.block_until_ready(
        mlp_forward(x2, w1, b1, w2, b2, weights_dtype=jnp.bfloat16))
    assert jnp.allclose(out3, ref2, atol=1e-1, rtol=1e-1), "mismatch vs reference (case 3)"

    print("KERNEL_OK")
</pallas_src>

<mosaic_0001>
module attributes {stable_mosaic.version = 11 : i64} {
  func.func @_mlp_kernel(%arg0: i32, %arg1: memref<8x128xf32, #tpu.memory_space<vmem>>, %arg2: memref<128x512xf32, #tpu.memory_space<vmem>>, %arg3: memref<1x512xf32, #tpu.memory_space<vmem>>, %arg4: memref<512x128xf32, #tpu.memory_space<vmem>>, %arg5: memref<1x128xf32, #tpu.memory_space<vmem>>, %arg6: memref<8x128xf32, #tpu.memory_space<vmem>>) attributes {dimension_semantics = [#tpu.dimension_semantics<parallel>], iteration_bounds = array<i64: 1>, scalar_prefetch = 0 : i64, scratch_operands = 0 : i64, tpu.core_type = #tpu.core_type<tc>, window_params = [{transform_indices = @transform_0, window_bounds = array<i64: 8, 128>}, {pipeline_mode = #tpu.pipeline_mode<synchronous>, transform_indices = @transform_1, window_bounds = array<i64: 128, 512>}, {pipeline_mode = #tpu.pipeline_mode<synchronous>, transform_indices = @transform_2, window_bounds = array<i64: 1, 512>}, {pipeline_mode = #tpu.pipeline_mode<synchronous>, transform_indices = @transform_3, window_bounds = array<i64: 512, 128>}, {pipeline_mode = #tpu.pipeline_mode<synchronous>, transform_indices = @transform_4, window_bounds = array<i64: 1, 128>}, {transform_indices = @transform_5, window_bounds = array<i64: 8, 128>}]} {
    %c0 = arith.constant 0 : index
    %c0_0 = arith.constant 0 : index
    %0 = vector.load %arg1[%c0, %c0_0] : memref<8x128xf32, #tpu.memory_space<vmem>>, vector<8x128xf32>
    %c0_1 = arith.constant 0 : index
    %c0_2 = arith.constant 0 : index
    %1 = vector.load %arg2[%c0_1, %c0_2] : memref<128x512xf32, #tpu.memory_space<vmem>>, vector<128x512xf32>
    %cst = arith.constant dense<0.000000e+00> : vector<8x512xf32>
    %2 = tpu.matmul %0, %1, %cst {dimension_numbers = #tpu.dot_dimension_numbers<[1], [0], [0], [1], [0, 0, 1, 1], [], []>} : vector<8x128xf32>, vector<128x512xf32>, vector<8x512xf32> -> vector<8x512xf32>
    %c0_3 = arith.constant 0 : index
    %c0_4 = arith.constant 0 : index
    %3 = vector.load %arg3[%c0_3, %c0_4] : memref<1x512xf32, #tpu.memory_space<vmem>>, vector<1x512xf32>
    %4 = vector.broadcast %3 : vector<1x512xf32> to vector<8x512xf32>
    %5 = arith.addf %2, %4 : vector<8x512xf32>
    %cst_5 = arith.constant 5.000000e-01 : f32
    %6 = vector.broadcast %cst_5 : f32 to vector<8x512xf32>
    %7 = arith.mulf %6, %5 : vector<8x512xf32>
    %cst_6 = arith.constant 0.707106769 : f32
    %8 = vector.broadcast %cst_6 : f32 to vector<8x512xf32>
    %9 = arith.mulf %5, %8 : vector<8x512xf32>
    %10 = math.erf %9 : vector<8x512xf32>
    %cst_7 = arith.constant 1.000000e+00 : f32
    %11 = vector.broadcast %cst_7 : f32 to vector<8x512xf32>
    %12 = arith.addf %11, %10 : vector<8x512xf32>
    %13 = arith.mulf %7, %12 : vector<8x512xf32>
    %c0_8 = arith.constant 0 : index
    %c0_9 = arith.constant 0 : index
    %14 = vector.load %arg4[%c0_8, %c0_9] : memref<512x128xf32, #tpu.memory_space<vmem>>, vector<512x128xf32>
    %cst_10 = arith.constant dense<0.000000e+00> : vector<8x128xf32>
    %15 = tpu.matmul %13, %14, %cst_10 {dimension_numbers = #tpu.dot_dimension_numbers<[1], [0], [0], [1], [0, 0, 1, 1], [], []>} : vector<8x512xf32>, vector<512x128xf32>, vector<8x128xf32> -> vector<8x128xf32>
    %c0_11 = arith.constant 0 : index
    %c0_12 = arith.constant 0 : index
    %16 = vector.load %arg5[%c0_11, %c0_12] : memref<1x128xf32, #tpu.memory_space<vmem>>, vector<1x128xf32>
    %17 = vector.broadcast %16 : vector<1x128xf32> to vector<8x128xf32>
    %18 = arith.addf %15, %17 : vector<8x128xf32>
    %c0_13 = arith.constant 0 : index
    %c0_14 = arith.constant 0 : index
    %19 = vector.load %arg6[%c0_13, %c0_14] : memref<8x128xf32, #tpu.memory_space<vmem>>, vector<8x128xf32>
    tpu.vector_store %arg6[%c0_13, %c0_14], %18 {strides = array<i32>} : memref<8x128xf32, #tpu.memory_space<vmem>>, vector<8x128xf32>,
    return
  }
  func.func @transform_0(%arg0: i32) -> (i32, i32) {
    %c0_i32 = arith.constant 0 : i32
    %c0_i32_0 = arith.constant 0 : i32
    return %arg0, %c0_i32 : i32, i32
  }
  func.func @transform_1(%arg0: i32) -> (i32, i32) {
    %c0_i32 = arith.constant 0 : i32
    %c0_i32_0 = arith.constant 0 : i32
    %c0_i32_1 = arith.constant 0 : i32
    return %c0_i32, %c0_i32_0 : i32, i32
  }
  func.func @transform_2(%arg0: i32) -> (i32, i32) {
    %c0_i32 = arith.constant 0 : i32
    %c0_i32_0 = arith.constant 0 : i32
    %c0_i32_1 = arith.constant 0 : i32
    return %c0_i32, %c0_i32_0 : i32, i32
  }
  func.func @transform_3(%arg0: i32) -> (i32, i32) {
    %c0_i32 = arith.constant 0 : i32
    %c0_i32_0 = arith.constant 0 : i32
    %c0_i32_1 = arith.constant 0 : i32
    return %c0_i32, %c0_i32_0 : i32, i32
  }
  func.func @transform_4(%arg0: i32) -> (i32, i32) {
    %c0_i32 = arith.constant 0 : i32
    %c0_i32_0 = arith.constant 0 : i32
    %c0_i32_1 = arith.constant 0 : i32
    return %c0_i32, %c0_i32_0 : i32, i32
  }
  func.func @transform_5(%arg0: i32) -> (i32, i32) {
    %c0_i32 = arith.constant 0 : i32
    %c0_i32_0 = arith.constant 0 : i32
    return %arg0, %c0_i32 : i32, i32
  }
}

</mosaic_0001>

<bundles_post_ra>
// kernel: tpu_custom_call.1
= control target key start
LH: loop header
LB: loop body
LE: loop exit
PB: predicated region body
PF: predicated region fallthrough
CT: control target
= control target key end

     0   :  { %10 = vsyncpa [#allocation3], 0  ;;  %s954_s0 = inlined_call_operand.hbm [shape: f32[4,128], index: 0, kind: input, shape index: {}]   ;;  %s955_s1 = inlined_call_operand.hbm [shape: f32[128,512], index: 1, kind: input, shape index: {}]   ;;  %s956_s2 = inlined_call_operand.vmem [shape: f32[1,512], index: 2, kind: input, shape index: {}]   ;;  %s957_s3 = inlined_call_operand.hbm [shape: f32[512,128], index: 3, kind: input, shape index: {}]   ;;  %s958_s4 = inlined_call_operand.vmem [shape: f32[1,128], index: 4, kind: input, shape index: {}]   ;;  %s959_s5 = inlined_call_operand.hbm [shape: f32[4,128], index: 5, kind: output, shape index: {}]  }
   0x1   :  { %11 = vsyncpa [#allocation6], 0 }
   0x2   :  { %12 = vsyncpa [#allocation4], 0 }
   0x3   :  { %17 = vsyncadd [#allocation3], 64  ;;  %s853_s18 = smov [#allocation5]   ;;  %s759_s22 = scalar_lea.hbm %s955_s1, 8192 }
   0x4   :  { %s30_s19 = sshll.u32 %s853_s18, 4  ;;  %p760_p0 = scmp.ne.s32.totalorder %s955_s1, %s759_s22  ;;  %s31_s19 = int_to_ptr.vmem [resolvable:$true] %s30_s19 }
   0x5   :  { %p763_p1 = scmp.lt.u32.totalorder %s759_s22, %s955_s1 }
   0x7   :  { %p765_p2 = pnand %p763_p1, %p760_p0 }
   0x9   :  { %768 = shalt.err (!%p765_p2)
}
   0xa   :  { %s769_s27 = scalar_lea.vmem %s31_s19, 8192  ;;  %p774_p4 = scmp.lt.s32.totalorder %s31_s19, %s31_s19 }
   0xb   :  { %p770_p3 = scmp.ne.s32.totalorder %s31_s19, %s769_s27  ;;  %p775_p5 = scmp.lt.s32.totalorder %s769_s27, %s769_s27 }
   0xd   :  { %p776_p6 = por %p775_p5, %p774_p4 }
   0xf   :  { %p777_p7 = pnand %p776_p6, %p770_p3 }
  0x11   :  { %780 = shalt.err (!%p777_p7)
}
  0x12   :  { %s854_s28 = smov 512   ;;  %s855_s29 = smov 32  }
  0x13   :  { %36 = dma.hbm_to_vmem [thread:$0]  %s955_s1, 8192, %s31_s19, [#allocation6], %s854_s28, %s854_s28, %s855_s29  }
  0x14   :  { %s856_s7 = smov [#allocation2]   ;;  %s781_s11 = scalar_lea.hbm %s954_s0, 64 }
  0x15   :  { %s18_s8 = sshll.u32 %s856_s7, 4  ;;  %p782_p8 = scmp.ne.s32.totalorder %s954_s0, %s781_s11  ;;  %s19_s8 = int_to_ptr.vmem [resolvable:$true] %s18_s8 }
  0x16   :  { %p785_p9 = scmp.lt.u32.totalorder %s781_s11, %s954_s0 }
  0x18   :  { %p787_p10 = pnand %p785_p9, %p782_p8 }
  0x1a   :  { %790 = shalt.err (!%p787_p10)
}
  0x1b   :  { %s791_s16 = scalar_lea.vmem %s19_s8, 64  ;;  %s795_s1 = scalar_lea.vmem %s19_s8, 128 }
  0x1c   :  { %p792_p11 = scmp.ne.s32.totalorder %s19_s8, %s791_s16  ;;  %p796_p12 = scmp.lt.s32.totalorder %s19_s8, %s19_s8 }
  0x1d   :  { %p797_p13 = scmp.lt.s32.totalorder %s795_s1, %s791_s16 }
  0x1f   :  { %p798_p0 = por %p797_p13, %p796_p12 }
  0x21   :  { %p799_p1 = pnand %p798_p0, %p792_p11 }
  0x23   :  { %802 = shalt.err (!%p799_p1)
}
  0x24   :  { %s857_s17 = smov 64   ;;  %s858_s18 = smov 4  }
  0x25   :  { %24 = dma.hbm_to_vmem [thread:$0]  %s954_s0, 64, %s19_s8, [#allocation3], %s857_s17, %s857_s17, %s858_s18  }
  0x26   :  { %s859_s21 = smov [#allocation7]   ;;  %s803_s25 = scalar_lea.hbm %s957_s3, 8192 }
  0x27   :  { %s44_s22 = sshll.u32 %s859_s21, 4  ;;  %p804_p2 = scmp.ne.s32.totalorder %s957_s3, %s803_s25  ;;  %s45_s22 = int_to_ptr.vmem [resolvable:$true] %s44_s22 }
  0x28   :  { %p807_p3 = scmp.lt.u32.totalorder %s803_s25, %s957_s3 }
  0x2a   :  { %p809_p4 = pnand %p807_p3, %p804_p2 }
  0x2c   :  { %812 = shalt.err (!%p809_p4)
}
  0x2d   :  { %s813_s30 = scalar_lea.vmem %s45_s22, 8192  ;;  %p818_p6 = scmp.lt.s32.totalorder %s45_s22, %s45_s22 }
  0x2e   :  { %p814_p5 = scmp.ne.s32.totalorder %s45_s22, %s813_s30  ;;  %p819_p7 = scmp.lt.s32.totalorder %s813_s30, %s813_s30 }
  0x30   :  { %p820_p8 = por %p819_p7, %p818_p6 }
  0x32   :  { %p821_p9 = pnand %p820_p8, %p814_p5 }
  0x34   :  { %824 = shalt.err (!%p821_p9)
}
  0x35   :  { %s860_s0 = smov 128   ;;  %s861_s6 = smov 8  }
  0x36   :  { %50 = dma.hbm_to_vmem [thread:$0]  %s957_s3, 8192, %s45_s22, [#allocation6], %s860_s0, %s860_s0, %s861_s6  }
  0x37   :  { %847 = dma.done.wait [#allocation3], 128  }
  0x38   :  { %848 = vsyncadd [#allocation3], 4294967168 }
  0x39   :  { %849 = dma.done.wait [#allocation6], 16384  }
  0x3a   :  { %850 = vsyncadd [#allocation6], 4294950912  ;;  %v862_v0 = vmov 0.0   ;;  %v64_v1 = vld [vmem:[#allocation5 + $0x8] sm:$0xff]  ;;  %v66_v3 = vld [vmem:[#allocation5 + $0x18] sm:$0xff] }
  0x3b   :  { %213 = vmatprep.mubr.f32.mxu0 %v862_v0  ;;  %284 = vmatprep.mubr.f32.mxu1 %v862_v0  ;;  %v68_v2 = vld [vmem:[#allocation5 + $0x28] sm:$0xff]  ;;  %v70_v5 = vld [vmem:[#allocation5 + $0x38] sm:$0xff]  ;;  %v63_v6 = vld [vmem:[#allocation5] sm:$0xff] }
  0x3c   :  { %v612_v4 = vpack.c.bf16 %v68_v2, %v64_v1  ;;  %v67_v7 = vld [vmem:[#allocation5 + $0x20] sm:$0xff]  ;;  %v644_v8 = vpack.c.bf16 %v70_v5, %v66_v3  ;;  %v65_v10 = vld [vmem:[#allocation5 + $0x10] sm:$0xff]  ;;  %v72_v12 = vld [vmem:[#allocation5 + $0x48] sm:$0xff] }
  0x3d   :  { %v614_v9 = vpack.c.bf16 %v67_v7, %v63_v6  ;;  %v69_v11 = vld [vmem:[#allocation5 + $0x30] sm:$0xff]  ;;  %v76_v14 = vld [vmem:[#allocation5 + $0x68] sm:$0xff]  ;;  %v74_v15 = vld [vmem:[#allocation5 + $0x58] sm:$0xff] }
  0x3e   :  { %613 = vmatprep.subr.bf16.mxu0 %v612_v4  ;;  %v646_v13 = vpack.c.bf16 %v69_v11, %v65_v10  ;;  %v78_v16 = vld [vmem:[#allocation5 + $0x78] sm:$0xff]  ;;  %645 = vmatprep.subr.bf16.mxu1 %v644_v8  ;;  %v616_v17 = vpack.c.bf16 %v76_v14, %v72_v12  ;;  %v71_v19 = vld [vmem:[#allocation5 + $0x40] sm:$0xff]  ;;  %v73_v21 = vld [vmem:[#allocation5 + $0x50] sm:$0xff] }
  0x3f   :  { %615 = vmatpush1.bf16.msra.mxu0 %v614_v9  ;;  %v648_v18 = vpack.c.bf16 %v78_v16, %v74_v15  ;;  %v75_v20 = vld [vmem:[#allocation5 + $0x60] sm:$0xff]  ;;  %v77_v23 = vld [vmem:[#allocation5 + $0x70] sm:$0xff]  ;;  %v80_v24 = vld [vmem:[#allocation5 + $0x88] sm:$0xff] }
  0x40   :  { %647 = vmatpush1.bf16.msra.mxu1 %v646_v13  ;;  %v618_v22 = vpack.c.bf16 %v75_v20, %v71_v19  ;;  %v84_v25 = vld [vmem:[#allocation5 + $0xa8] sm:$0xff]  ;;  %617 = vmatprep.subr.bf16.mxu0 %v616_v17  ;;  %v650_v26 = vpack.c.bf16 %v77_v23, %v73_v21  ;;  %v82_v28 = vld [vmem:[#allocation5 + $0x98] sm:$0xff]  ;;  %v79_v30 = vld [vmem:[#allocation5 + $0x80] sm:$0xff] }
  0x41   :  { %649 = vmatprep.subr.bf16.mxu1 %v648_v18  ;;  %v620_v27 = vpack.c.bf16 %v84_v25, %v80_v24  ;;  %v86_v29 = vld [vmem:[#allocation5 + $0xb8] sm:$0xff]  ;;  %v83_v32 = vld [vmem:[#allocation5 + $0xa0] sm:$0xff]  ;;  %v81_v33 = vld [vmem:[#allocation5 + $0x90] sm:$0xff] }
  0x42   :  { %v652_v31 = vpack.c.bf16 %v86_v29, %v82_v28  ;;  %v85_v34 = vld [vmem:[#allocation5 + $0xb0] sm:$0xff]  ;;  %v622_v35 = vpack.c.bf16 %v83_v32, %v79_v30  ;;  %v88_v36 = vld [vmem:[#allocation5 + $0xc8] sm:$0xff]  ;;  %v90_v38 = vld [vmem:[#allocation5 + $0xd8] sm:$0xff] }
  0x43   :  { %619 = vmatpush1.bf16.msra.mxu0 %v618_v22  ;;  %v92_v37 = vld [vmem:[#allocation5 + $0xe8] sm:$0xff]  ;;  %v654_v39 = vpack.c.bf16 %v85_v34, %v81_v33  ;;  %v94_v41 = vld [vmem:[#allocation5 + $0xf8] sm:$0xff]  ;;  %v87_v42 = vld [vmem:[#allocation5 + $0xc0] sm:$0xff] }
  0x44   :  { %651 = vmatpush1.bf16.msra.mxu1 %v650_v26  ;;  %621 = vmatprep.subr.bf16.mxu0 %v620_v27  ;;  %v624_v40 = vpack.c.bf16 %v92_v37, %v88_v36  ;;  %v91_v43 = vld [vmem:[#allocation5 + $0xe0] sm:$0xff]  ;;  %v656_v44 = vpack.c.bf16 %v94_v41, %v90_v38  ;;  %v89_v45 = vld [vmem:[#allocation5 + $0xd0] sm:$0xff]  ;;  %v96_v47 = vld [vmem:[#allocation5 + $0x108] sm:$0xff] }
  0x45   :  { %653 = vmatprep.subr.bf16.mxu1 %v652_v31  ;;  %v93_v46 = vld [vmem:[#allocation5 + $0xf0] sm:$0xff]  ;;  %v100_v48 = vld [vmem:[#allocation5 + $0x128] sm:$0xff]  ;;  %v98_v49 = vld [vmem:[#allocation5 + $0x118] sm:$0xff]  ;;  %v626_v51 = vpack.c.bf16 %v91_v43, %v87_v42 }
  0x46   :  { %v102_v50 = vld [vmem:[#allocation5 + $0x138] sm:$0xff]  ;;  %v658_v52 = vpack.c.bf16 %v93_v46, %v89_v45  ;;  %v628_v53 = vpack.c.bf16 %v100_v48, %v96_v47  ;;  %v95_v54 = vld [vmem:[#allocation5 + $0x100] sm:$0xff]  ;;  %v97_v56 = vld [vmem:[#allocation5 + $0x110] sm:$0xff] }
  0x47   :  { %623 = vmatpush1.bf16.msra.mxu0 %v622_v35  ;;  %v99_v55 = vld [vmem:[#allocation5 + $0x120] sm:$0xff]  ;;  %v660_v57 = vpack.c.bf16 %v102_v50, %v98_v49  ;;  %v101_v58 = vld [vmem:[#allocation5 + $0x130] sm:$0xff]  ;;  %v104_v59 = vld [vmem:[#allocation5 + $0x148] sm:$0xff] }
  0x48   :  { %655 = vmatpush1.bf16.msra.mxu1 %v654_v39  ;;  %625 = vmatprep.subr.bf16.mxu0 %v624_v40  ;;  %v108_v60 = vld [vmem:[#allocation5 + $0x168] sm:$0xff]  ;;  %v106_v61 = vld [vmem:[#allocation5 + $0x158] sm:$0xff]  ;;  %v630_v63 = vpack.c.bf16 %v99_v55, %v95_v54  ;;  %v662_v0 = vpack.c.bf16 %v101_v58, %v97_v56  ;;  %v103_v2 = vld [vmem:[#allocation5 + $0x140] sm:$0xff] }
  0x49   :  { %657 = vmatprep.subr.bf16.mxu1 %v656_v44  ;;  %v110_v62 = vld [vmem:[#allocation5 + $0x178] sm:$0xff]  ;;  %v632_v1 = vpack.c.bf16 %v108_v60, %v104_v59  ;;  %v107_v3 = vld [vmem:[#allocation5 + $0x160] sm:$0xff]  ;;  %v105_v4 = vld [vmem:[#allocation5 + $0x150] sm:$0xff] }
  0x4a   :  { %v664_v5 = vpack.c.bf16 %v110_v62, %v106_v61  ;;  %v109_v6 = vld [vmem:[#allocation5 + $0x170] sm:$0xff]  ;;  %v112_v7 = vld [vmem:[#allocation5 + $0x188] sm:$0xff]  ;;  %v114_v9 = vld [vmem:[#allocation5 + $0x198] sm:$0xff]  ;;  %v634_v11 = vpack.c.bf16 %v107_v3, %v103_v2 }
  0x4b   :  { %627 = vmatpush1.bf16.msra.mxu0 %v626_v51  ;;  %v116_v8 = vld [vmem:[#allocation5 + $0x1a8] sm:$0xff]  ;;  %v118_v10 = vld [vmem:[#allocation5 + $0x1b8] sm:$0xff]  ;;  %v666_v12 = vpack.c.bf16 %v109_v6, %v105_v4  ;;  %v111_v14 = vld [vmem:[#allocation5 + $0x180] sm:$0xff] }
  0x4c   :  { %659 = vmatpush1.bf16.msra.mxu1 %v658_v52  ;;  %629 = vmatprep.subr.bf16.mxu0 %v628_v53  ;;  %v636_v13 = vpack.c.bf16 %v116_v8, %v112_v7  ;;  %v115_v15 = vld [vmem:[#allocation5 + $0x1a0] sm:$0xff]  ;;  %v113_v16 = vld [vmem:[#allocation5 + $0x190] sm:$0xff]  ;;  %v668_v17 = vpack.c.bf16 %v118_v10, %v114_v9  ;;  %v120_v19 = vld [vmem:[#allocation5 + $0x1c8] sm:$0xff] }
  0x4d   :  { %661 = vmatprep.subr.bf16.mxu1 %v660_v57  ;;  %v117_v18 = vld [vmem:[#allocation5 + $0x1b0] sm:$0xff]  ;;  %v124_v20 = vld [vmem:[#allocation5 + $0x1e8] sm:$0xff]  ;;  %v122_v21 = vld [vmem:[#allocation5 + $0x1d8] sm:$0xff]  ;;  %v638_v23 = vpack.c.bf16 %v115_v15, %v111_v14 }
  0x4e   :  { %v126_v22 = vld [vmem:[#allocation5 + $0x1f8] sm:$0xff]  ;;  %v670_v24 = vpack.c.bf16 %v117_v18, %v113_v16  ;;  %v640_v25 = vpack.c.bf16 %v124_v20, %v120_v19  ;;  %v119_v26 = vld [vmem:[#allocation5 + $0x1c0] sm:$0xff]  ;;  %v121_v28 = vld [vmem:[#allocation5 + $0x1d0] sm:$0xff] }
  0x4f   :  { %631 = vmatpush1.bf16.msra.mxu0 %v630_v63  ;;  %v123_v27 = vld [vmem:[#allocation5 + $0x1e0] sm:$0xff]  ;;  %v672_v29 = vpack.c.bf16 %v126_v22, %v122_v21  ;;  %v125_v30 = vld [vmem:[#allocation5 + $0x1f0] sm:$0xff]  ;;  %v328_v32 = vld [vmem:[#allocation7 + $0x88] sm:$0xff] }
  0x50   :  { %663 = vmatpush1.bf16.msra.mxu1 %v662_v0  ;;  %633 = vmatprep.subr.bf16.mxu0 %v632_v1  ;;  %v327_v31 = vld [vmem:[#allocation7 + $0x80] sm:$0xff]  ;;  %v360_v34 = vld [vmem:[#allocation7 + $0x188] sm:$0xff]  ;;  %v642_v35 = vpack.c.bf16 %v123_v27, %v119_v26  ;;  %v674_v36 = vpack.c.bf16 %v125_v30, %v121_v28  ;;  %v329_v43 = vld [vmem:[#allocation7 + $0x90] sm:$0xff] }
  0x51   :  { %665 = vmatprep.subr.bf16.mxu1 %v664_v5  ;;  %v359_v33 = vld [vmem:[#allocation7 + $0x180] sm:$0xff]  ;;  %v676_v37 = vpack.c.bf16 %v328_v32, %v327_v31  ;;  %v312_v39 = vld [vmem:[#allocation7 + $0x8] sm:$0xff]  ;;  %v330_v44 = vld [vmem:[#allocation7 + $0x98] sm:$0xff] }
  0x52   :  { %v311_v38 = vld [vmem:[#allocation7] sm:$0xff]  ;;  %v708_v41 = vpack.c.bf16 %v360_v34, %v359_v33  ;;  %v344_v42 = vld [vmem:[#allocation7 + $0x108] sm:$0xff]  ;;  %v361_v45 = vld [vmem:[#allocation7 + $0x190] sm:$0xff]  ;;  %v680_v50 = vpack.c.bf16 %v330_v44, %v329_v43 }
  0x53   :  { %635 = vmatpush1.bf16.msra.mxu0 %v634_v11  ;;  %v343_v40 = vld [vmem:[#allocation7 + $0x100] sm:$0xff]  ;;  %v362_v46 = vld [vmem:[#allocation7 + $0x198] sm:$0xff]  ;;  %v678_v48 = vpack.c.bf16 %v312_v39, %v311_v38  ;;  %v313_v51 = vld [vmem:[#allocation7 + $0x10] sm:$0xff] }
  0x54   :  { %667 = vmatpush1.bf16.msra.mxu1 %v666_v12  ;;  %637 = vmatprep.subr.bf16.mxu0 %v636_v13  ;;  %v62_v47 = vld [vmem:[#allocation2] sm:$0xff]  ;;  %v710_v49 = vpack.c.bf16 %v344_v42, %v343_v40  ;;  %v345_v53 = vld [vmem:[#allocation7 + $0x110] sm:$0xff]  ;;  %v712_v54 = vpack.c.bf16 %v362_v46, %v361_v45  ;;  %v331_v56 = vld [vmem:[#allocation7 + $0xa0] sm:$0xff] }
  0x55   :  { %669 = vmatprep.subr.bf16.mxu1 %v668_v17  ;;  %v314_v52 = vld [vmem:[#allocation7 + $0x18] sm:$0xff]  ;;  %v332_v57 = vld [vmem:[#allocation7 + $0xa8] sm:$0xff]  ;;  %v363_v58 = vld [vmem:[#allocation7 + $0x1a0] sm:$0xff] }
  0x56   :  { %v346_v55 = vld [vmem:[#allocation7 + $0x118] sm:$0xff]  ;;  %v364_v59 = vld [vmem:[#allocation7 + $0x1a8] sm:$0xff]  ;;  %v682_v60 = vpack.c.bf16 %v314_v52, %v313_v51  ;;  %v684_v62 = vpack.c.bf16 %v332_v57, %v331_v56  ;;  %v315_v63 = vld [vmem:[#allocation7 + $0x20] sm:$0xff] }
  0x57   :  { %639 = vmatpush1.bf16.msra.mxu0 %v638_v23  ;;  %v714_v61 = vpack.c.bf16 %v346_v55, %v345_v53  ;;  %v316_v0 = vld [vmem:[#allocation7 + $0x28] sm:$0xff]  ;;  %v716_v1 = vpack.c.bf16 %v364_v59, %v363_v58  ;;  %v347_v2 = vld [vmem:[#allocation7 + $0x120] sm:$0xff]  ;;  %v333_v6 = vld [vmem:[#allocation7 + $0xb0] sm:$0xff] }
  0x58   :  { %671 = vmatpush1.bf16.msra.mxu1 %v670_v24  ;;  %641 = vmatprep.subr.bf16.mxu0 %v640_v25  ;;  %v348_v3 = vld [vmem:[#allocation7 + $0x128] sm:$0xff]  ;;  %v686_v4 = vpack.c.bf16 %v316_v0, %v315_v63  ;;  %v334_v7 = vld [vmem:[#allocation7 + $0xb8] sm:$0xff]  ;;  %v365_v8 = vld [vmem:[#allocation7 + $0x1b0] sm:$0xff] }
  0x59   :  { %673 = vmatprep.subr.bf16.mxu1 %v672_v29  ;;  %v718_v5 = vpack.c.bf16 %v348_v3, %v347_v2  ;;  %v688_v9 = vpack.c.bf16 %v334_v7, %v333_v6  ;;  %v366_v10 = vld [vmem:[#allocation7 + $0x1b8] sm:$0xff]  ;;  %v317_v11 = vld [vmem:[#allocation7 + $0x30] sm:$0xff]  ;;  %v335_v18 = vld [vmem:[#allocation7 + $0xc0] sm:$0xff]  ;;  %v129_v2 = vlaneseq }
  0x5a   :  { %v318_v12 = vld [vmem:[#allocation7 + $0x38] sm:$0xff]  ;;  %v720_v13 = vpack.c.bf16 %v366_v10, %v365_v8  ;;  %v349_v15 = vld [vmem:[#allocation7 + $0x130] sm:$0xff]  ;;  %v336_v19 = vld [vmem:[#allocation7 + $0xc8] sm:$0xff] }
  0x5b   :  { %643 = vmatpush1.bf16.msra.mxu0 %v642_v35  ;;  %v690_v14 = vpack.c.bf16 %v318_v12, %v317_v11  ;;  %v350_v16 = vld [vmem:[#allocation7 + $0x138] sm:$0xff]  ;;  %v367_v20 = vld [vmem:[#allocation7 + $0x1c0] sm:$0xff]  ;;  %v692_v21 = vpack.c.bf16 %v336_v19, %v335_v18  ;;  %v368_v22 = vld [vmem:[#allocation7 + $0x1c8] sm:$0xff]  ;;  %v130_v3 = vshrl.u32 %v129_v2, 7 }
  0x5c   :  { %675 = vmatpush1.bf16.msra.mxu1 %v674_v36  ;;  %677 = vmatprep.subr.bf16.mxu0 %v676_v37  ;;  %v722_v17 = vpack.c.bf16 %v350_v16, %v349_v15  ;;  %v319_v23 = vld [vmem:[#allocation7 + $0x40] sm:$0xff]  ;;  %v320_v24 = vld [vmem:[#allocation7 + $0x48] sm:$0xff]  ;;  %v724_v25 = vpack.c.bf16 %v368_v22, %v367_v20  ;;  %v337_v30 = vld [vmem:[#allocation7 + $0xd0] sm:$0xff] }
  0x5d   :  { %709 = vmatprep.subr.bf16.mxu1 %v708_v41  ;;  %v694_v26 = vpack.c.bf16 %v320_v24, %v319_v23  ;;  %v351_v27 = vld [vmem:[#allocation7 + $0x140] sm:$0xff]  ;;  %v352_v28 = vld [vmem:[#allocation7 + $0x148] sm:$0xff]  ;;  %v338_v31 = vld [vmem:[#allocation7 + $0xd8] sm:$0xff]  ;;  %v139_v6 = vsub.s32 2, %v130_v3  ;;  %v135_v7 = vsub.s32 1, %v130_v3  ;;  %v143_v8 = vsub.s32 3, %v130_v3 }
  0x5e   :  { %214 = vmatmul.mubr.f32.vlgmr.msra.gmra.mrb[0].mxu0 %v62_v47  ;;  %v726_v29 = vpack.c.bf16 %v352_v28, %v351_v27  ;;  %v369_v32 = vld [vmem:[#allocation7 + $0x1d0] sm:$0xff]  ;;  %v696_v33 = vpack.c.bf16 %v338_v31, %v337_v30  ;;  %v370_v34 = vld [vmem:[#allocation7 + $0x1d8] sm:$0xff]  ;;  %v339_v42 = vld [vmem:[#allocation7 + $0xe0] sm:$0xff] }
  0x5f   :  { %285 = vmatmul.mubr.f32.vlgmr.msra.gmra.mrb[0].mxu1 %v62_v47  ;;  %679 = vmatpush3.bf16.msra.mxu0 %v678_v48  ;;  %v321_v35 = vld [vmem:[#allocation7 + $0x50] sm:$0xff]  ;;  %v322_v36 = vld [vmem:[#allocation7 + $0x58] sm:$0xff]  ;;  %v728_v37 = vpack.c.bf16 %v370_v34, %v369_v32  ;;  %v340_v43 = vld [vmem:[#allocation7 + $0xe8] sm:$0xff] }
  0x60   :  { %711 = vmatpush3.bf16.msra.mxu1 %v710_v49  ;;  %681 = vmatprep.subr.bf16.mxu0 %v680_v50  ;;  %v698_v38 = vpack.c.bf16 %v322_v36, %v321_v35  ;;  %v353_v39 = vld [vmem:[#allocation7 + $0x150] sm:$0xff]  ;;  %v354_v40 = vld [vmem:[#allocation7 + $0x158] sm:$0xff]  ;;  %v371_v44 = vld [vmem:[#allocation7 + $0x1e0] sm:$0xff]  ;;  %v700_v45 = vpack.c.bf16 %v340_v43, %v339_v42 }
  0x61   :  { %713 = vmatprep.subr.bf16.mxu1 %v712_v54  ;;  %v730_v41 = vpack.c.bf16 %v354_v40, %v353_v39  ;;  %v372_v46 = vld [vmem:[#allocation7 + $0x1e8] sm:$0xff]  ;;  %v323_v47 = vld [vmem:[#allocation7 + $0x60] sm:$0xff]  ;;  %v341_v54 = vld [vmem:[#allocation7 + $0xf0] sm:$0xff] }
  0x62   :  { %v324_v48 = vld [vmem:[#allocation7 + $0x68] sm:$0xff]  ;;  %v732_v49 = vpack.c.bf16 %v372_v46, %v371_v44  ;;  %v355_v51 = vld [vmem:[#allocation7 + $0x160] sm:$0xff]  ;;  %v342_v55 = vld [vmem:[#allocation7 + $0xf8] sm:$0xff] }
  0x63   :  { %683 = vmatpush3.bf16.msra.mxu0 %v682_v60  ;;  %v702_v50 = vpack.c.bf16 %v324_v48, %v323_v47  ;;  %v356_v52 = vld [vmem:[#allocation7 + $0x168] sm:$0xff]  ;;  %v373_v56 = vld [vmem:[#allocation7 + $0x1f0] sm:$0xff]  ;;  %v704_v57 = vpack.c.bf16 %v342_v55, %v341_v54  ;;  %v374_v58 = vld [vmem:[#allocation7 + $0x1f8] sm:$0xff] }
  0x64   :  { %715 = vmatpush3.bf16.msra.mxu1 %v714_v61  ;;  %685 = vmatprep.subr.bf16.mxu0 %v684_v62  ;;  %v734_v53 = vpack.c.bf16 %v356_v52, %v355_v51  ;;  %v325_v59 = vld [vmem:[#allocation7 + $0x70] sm:$0xff]  ;;  %v326_v60 = vld [vmem:[#allocation7 + $0x78] sm:$0xff]  ;;  %v736_v61 = vpack.c.bf16 %v374_v58, %v373_v56 }
  0x65   :  { %717 = vmatprep.subr.bf16.mxu1 %v716_v1  ;;  %v706_v62 = vpack.c.bf16 %v326_v60, %v325_v59  ;;  %v357_v63 = vld [vmem:[#allocation7 + $0x170] sm:$0xff]  ;;  %v358_v0 = vld [vmem:[#allocation7 + $0x178] sm:$0xff] }
  0x66   :  { %v738_v1 = vpack.c.bf16 %v358_v0, %v357_v63  ;;  %v541_v43 = vld [vmem:[%s958_s4] ss:$0 sm:$0xff] }
  0x67   :  { %687 = vmatpush3.bf16.msra.mxu0 %v686_v4  ;;  %v131_v4 = vsub.s32 0, %v130_v3 }
  0x68   :  { %719 = vmatpush3.bf16.msra.mxu1 %v718_v5  ;;  %689 = vmatprep.subr.bf16.mxu0 %v688_v9  ;;  %v127_v5 = vld [vmem:[%s956_s2] sm:$0xf] }
  0x69   :  { %721 = vmatprep.subr.bf16.mxu1 %v720_v13  ;;  %v132_v9 = vrot.slane %v127_v5, %v131_v4  ;;  %v140_v10 = vrot.slane %v127_v5, %v139_v6  ;;  %v136_v11 = vrot.slane %v127_v5, %v135_v7  ;;  %v144_v12 = vrot.slane %v127_v5, %v143_v8 }
  0x6b   :  { %691 = vmatpush3.bf16.msra.mxu0 %v690_v14 }
  0x6c   :  { %723 = vmatpush3.bf16.msra.mxu1 %v722_v17  ;;  %693 = vmatprep.subr.bf16.mxu0 %v692_v21 }
  0x6d   :  { %725 = vmatprep.subr.bf16.mxu1 %v724_v25 }
  0x6f   :  { %695 = vmatpush3.bf16.msra.mxu0 %v694_v26 }
  0x70   :  { %727 = vmatpush3.bf16.msra.mxu1 %v726_v29  ;;  %697 = vmatprep.subr.bf16.mxu0 %v696_v33 }
  0x71   :  { %729 = vmatprep.subr.bf16.mxu1 %v728_v37 }
  0x73   :  { %699 = vmatpush3.bf16.msra.mxu0 %v698_v38 }
  0x74   :  { %731 = vmatpush3.bf16.msra.mxu1 %v730_v41  ;;  %701 = vmatprep.subr.bf16.mxu0 %v700_v45 }
  0x75   :  { %733 = vmatprep.subr.bf16.mxu1 %v732_v49 }
  0x77   :  { %703 = vmatpush3.bf16.msra.mxu0 %v702_v50 }
  0x78   :  { %735 = vmatpush3.bf16.msra.mxu1 %v734_v53  ;;  %705 = vmatprep.subr.bf16.mxu0 %v704_v57 }
  0x79   :  { %737 = vmatprep.subr.bf16.mxu1 %v736_v61 }
  0x7b   :  { %707 = vmatpush3.bf16.msra.mxu0 %v706_v62 }
  0x7c   :  { %739 = vmatpush3.bf16.msra.mxu1 %v738_v1 }
 0x131   :  { %v215_v13 = vpop.f32.mrb[0].mxu0 }
 0x132   :  { %v216_v14 = vadd.f32 %v215_v13, %v132_v9  ;;  %v286_v15 = vpop.f32.mrb[0].mxu1  ;;  %v217_v16 = vpop.f32.mrb[1].mxu0 }
 0x133   :  { %v287_v17 = vadd.f32 %v286_v15, %v140_v10  ;;  %v218_v18 = vadd.f32 %v217_v16, %v136_v11  ;;  %v288_v19 = vpop.f32.mrb[1].mxu1 }
 0x134   :  { %v295_v20 = vmul.f32 0.70710677, %v216_v14  ;;  %v289_v21 = vadd.f32 %v288_v19, %v144_v12  ;;  %v291_v33 = vmul.f32 0.5, %v216_v14 }
 0x135   :  { %v297_v22 = vmul.f32 0.70710677, %v287_v17  ;;  %v296_v23 = vmul.f32 0.70710677, %v218_v18  ;;  %v292_v31 = vmul.f32 0.5, %v218_v18  ;;  %v293_v36 = vmul.f32 0.5, %v287_v17 }
 0x136   :  { %751 = verf.f32 %v295_v20  ;;  %v298_v24 = vmul.f32 0.70710677, %v289_v21  ;;  %v294_v34 = vmul.f32 0.5, %v289_v21 }
 0x137   :  { %753 = verf.f32 %v297_v22 }
 0x138   :  { %755 = verf.f32 %v296_v23 }
 0x139   :  { %757 = verf.f32 %v298_v24 }
 0x140   :  { %v752_v25 = vpop.eup %751 }
 0x141   :  { %v754_v26 = vpop.eup %753  ;;  %v303_v28 = vadd.f32 1.0, %v752_v25 }
 0x142   :  { %v756_v27 = vpop.eup %755  ;;  %v305_v30 = vadd.f32 1.0, %v754_v26 }
 0x143   :  { %v758_v29 = vpop.eup %757  ;;  %v304_v32 = vadd.f32 1.0, %v756_v27  ;;  %v307_v38 = vmul.f32 %v303_v28, %v291_v33 }
 0x144   :  { %v306_v35 = vadd.f32 1.0, %v758_v29  ;;  %v309_v40 = vmul.f32 %v305_v30, %v293_v36 }
 0x145   :  { %v308_v37 = vmul.f32 %v304_v32, %v292_v31 }
 0x146   :  { %v310_v39 = vmul.f32 %v306_v35, %v294_v34 }
 0x147   :  { %446 = vmatprep.mubr.f32.mxu0 %v308_v37 }
 0x148   :  { %516 = vmatprep.mubr.f32.mxu1 %v310_v39  ;;  %447 = vmatmul.mubr.f32.vlgmr.msra.gmra.mrb[2].mxu0 %v307_v38 }
 0x149   :  { %517 = vmatmul.mubr.f32.vlgmr.msra.gmra.mrb[2].mxu1 %v309_v40 }
 0x21b   :  { %v574_v41 = vpop.f32.mrb[2].mxu0 }
 0x21c   :  { %v609_v42 = vpop.f32.mrb[2].mxu1  ;;  %v575_v44 = vpop.f32.mrb[3].mxu0 }
 0x21d   :  { %v576_v45 = vadd.f32 %v575_v44, %v574_v41  ;;  %v610_v46 = vpop.f32.mrb[3].mxu1 }
 0x21e   :  { %v611_v47 = vadd.f32 %v610_v46, %v609_v42 }
 0x21f   :  { %v449_v48 = vadd.f32 %v576_v45, %v541_v43 }
 0x221   :  { %v519_v49 = vadd.f32 %v611_v47, %v449_v48 }
 0x223   :  { %522 = vst [vmem:[#allocation8] sm:$0xff] %v519_v49 }
 0x224   :  { %527 = vsyncadd [#allocation4], 64  ;;  %s863_s11 = smov [#allocation8]  }
 0x225   :  { %s528_s12 = sshll.u32 %s863_s11, 4  ;;  %s529_s12 = int_to_ptr.vmem [resolvable:$true] %s528_s12 }
 0x226   :  { %s825_s13 = scalar_lea.vmem %s529_s12, 64  ;;  %s829_s14 = scalar_lea.vmem %s529_s12, 128 }
 0x227   :  { %p826_p10 = scmp.ne.s32.totalorder %s529_s12, %s825_s13  ;;  %p830_p11 = scmp.lt.s32.totalorder %s529_s12, %s529_s12 }
 0x228   :  { %p831_p12 = scmp.lt.s32.totalorder %s829_s14, %s825_s13 }
 0x22a   :  { %p832_p13 = por %p831_p12, %p830_p11 }
 0x22c   :  { %p833_p0 = pnand %p832_p13, %p826_p10 }
 0x22e   :  { %836 = shalt.err (!%p833_p0)
}
 0x22f   :  { %s837_s16 = scalar_lea.hbm %s959_s5, 64 }
 0x230   :  { %p838_p1 = scmp.ne.s32.totalorder %s959_s5, %s837_s16  ;;  %p841_p2 = scmp.lt.u32.totalorder %s837_s16, %s959_s5 }
 0x232   :  { %p843_p3 = pnand %p841_p2, %p838_p1 }
 0x234   :  { %846 = shalt.err (!%p843_p3)
}
 0x235   :  { %534 = dma.vmem_to_hbm [thread:$0]  %s529_s12, 64, %s959_s5, [#allocation4], %s857_s17, %s857_s17, %s858_s18  }
 0x236   :  { %851 = dma.done.wait [#allocation4], 128  }
 0x237   :  { %852 = vsyncadd [#allocation4], 4294967168 }
 0x238   :  { %538 = vsyncpa [#allocation3], 1 }
 0x239   :  { %539 = vsyncpa [#allocation6], 1 }
 0x23a   :  { %540 = vsyncpa [#allocation4], 1 }

</bundles_post_ra>
